<compile_context>
chip_gen: v7x
topology: tpu7x:2x2x1
jax: 0.10.0
libtpu: 0.0.40
codegen_flags: <defaults>
</compile_context>

<pallas_src>
import functools

import jax
import jax.numpy as jnp
from jax.experimental import pallas as pl
from jax.experimental.pallas import tpu as pltpu


def _default_vmem_limit():
    # 3/4 of physical VMEM: ~96 MiB on v5e/v6e (128 MiB), ~48 MiB on v7x (64 MiB).
    try:
        cap = pltpu.get_tpu_info().vmem_capacity_bytes
        return int(min(cap * 3 // 4, 96 * 1024 * 1024))
    except Exception:
        return 48 * 1024 * 1024


VMEM_LIMIT = _default_vmem_limit()

# Tile defaults (budgeted to stay well under v7x's 64 MiB physical VMEM while
# keeping MXU-friendly 256-multiples and minimizing grid-step overhead).
TM_DEFAULT = 512    # rows per GEMM tile
TN_DEFAULT = 1024   # output columns per GEMM tile
TK_DEFAULT = 1536   # contraction chunk (K=768 therefore never split)
TI_DEFAULT = 1536   # FFN intermediate chunk inside the fused FFN kernel


def _pick_tile(dim, target, aligns):
    """Largest tile <= target dividing `dim`, preferring coarser alignment
    (256 keeps the v6e/v7x 2x256^2 MXU fully fed).  Falls back to the full
    dim, which is always a legal block shape."""
    if dim <= target:
        return dim
    for align in aligns:
        t = (target // align) * align
        while t >= align:
            if dim % t == 0:
                return t
            t -= align
    return dim


def _head_group(nh, dh):
    """Heads processed per attention grid step.  Pairs (128-lane aligned
    slabs) when possible, otherwise all heads in one step."""
    if nh % 2 == 0 and (2 * dh) % 128 == 0:
        return 2
    return nh


# ----------------------------------------------------------------------------
# Tiled linear (+ optional activation, + optional fused residual-add+LayerNorm)
# ----------------------------------------------------------------------------
def _linear_kernel(x_ref, w_ref, b_ref, *rest, act, fuse_ln, eps, multi_k):
    if fuse_ln:
        res_ref, g_ref, beta_ref = rest[:3]
        rest = rest[3:]
    o_ref = rest[0]
    acc_ref = rest[1] if multi_k else None

    def epilogue(acc):
        y = acc + b_ref[...].astype(jnp.float32)
        if act == "gelu":
            # TODO(synk): HF BERT default is erf-GELU; tanh-approx GELU used here.
            y = jax.nn.gelu(y, approximate=True)
        elif act == "tanh":
            y = jnp.tanh(y)
        if fuse_ln:
            y = y + res_ref[...].astype(jnp.float32)
            mu = jnp.mean(y, axis=-1, keepdims=True)
            d = y - mu
            var = jnp.mean(d * d, axis=-1, keepdims=True)
            y = d * jax.lax.rsqrt(var + eps) * g_ref[...] + beta_ref[...]
        o_ref[...] = y.astype(o_ref.dtype)

    if not multi_k:
        # Single k step: no accumulator round trip through VMEM scratch.
        epilogue(jnp.dot(x_ref[...], w_ref[...],
                         preferred_element_type=jnp.float32))
    else:
        @pl.when(pl.program_id(2) == 0)
        def _():
            acc_ref[...] = jnp.zeros_like(acc_ref)

        acc_ref[...] += jnp.dot(x_ref[...], w_ref[...],
                                preferred_element_type=jnp.float32)

        @pl.when(pl.program_id(2) == pl.num_programs(2) - 1)
        def _():
            epilogue(acc_ref[...])


def linear(x, w, b, *, act="none", residual=None, ln=None, eps=1e-12,
           out_dtype=jnp.bfloat16, tm=TM_DEFAULT, tn=TN_DEFAULT, tk=TK_DEFAULT):
    """y = [LN](act(x @ w + b) [+ residual]); x:[M,K] bf16, w:[K,N] bf16."""
    m, kdim = x.shape
    n = w.shape[1]
    fuse_ln = ln is not None
    assert (residual is not None) == fuse_ln

    tm = _pick_tile(m, tm, (16, 8))
    tk = _pick_tile(kdim, tk, (256, 128))
    # LayerNorm needs the whole row resident -> full N per tile when fused.
    tn = n if fuse_ln else _pick_tile(n, tn, (256, 128))
    nk = kdim // tk
    grid = (m // tm, n // tn, nk)

    in_specs = [
        pl.BlockSpec((tm, tk), lambda i, j, k: (i, k)),
        pl.BlockSpec((tk, tn), lambda i, j, k: (k, j)),
        pl.BlockSpec((1, tn), lambda i, j, k: (0, j)),
    ]
    args = [x, w, b.reshape(1, n)]
    if fuse_ln:
        gamma, beta = ln
        in_specs += [
            pl.BlockSpec((tm, tn), lambda i, j, k: (i, j)),
            pl.BlockSpec((1, tn), lambda i, j, k: (0, j)),
            pl.BlockSpec((1, tn), lambda i, j, k: (0, j)),
        ]
        args += [residual, gamma.reshape(1, n), beta.reshape(1, n)]

    scratch = [] if nk == 1 else [pltpu.VMEM((tm, tn), jnp.float32)]
    return pl.pallas_call(
        functools.partial(_linear_kernel, act=act, fuse_ln=fuse_ln, eps=eps,
                          multi_k=(nk > 1)),
        out_shape=jax.ShapeDtypeStruct((m, n), out_dtype),
        grid=grid,
        in_specs=in_specs,
        out_specs=pl.BlockSpec((tm, tn), lambda i, j, k: (i, j)),
        scratch_shapes=scratch,
        compiler_params=pltpu.CompilerParams(
            dimension_semantics=("parallel", "parallel", "arbitrary"),
            vmem_limit_bytes=VMEM_LIMIT,
        ),
    )(*args)


# ----------------------------------------------------------------------------
# Fused FFN: out = LN( gelu(x @ Wi + bi) @ Wo + bo + x )
# Intermediate chunks looped over an "arbitrary" grid axis; the [M, I]
# intermediate never touches HBM.
# ----------------------------------------------------------------------------
def _ffn_kernel(x_ref, iw_ref, ib_ref, ow_ref, ob_ref, g_ref, beta_ref,
                *rest, eps, multi_k):
    o_ref = rest[0]
    acc_ref = rest[1] if multi_k else None

    def chunk():
        inter = jnp.dot(x_ref[...], iw_ref[...],
                        preferred_element_type=jnp.float32)
        inter = inter + ib_ref[...].astype(jnp.float32)
        # TODO(synk): HF BERT default is erf-GELU; tanh-approx GELU used here.
        inter = jax.nn.gelu(inter, approximate=True)
        return jnp.dot(inter.astype(ow_ref.dtype), ow_ref[...],
                       preferred_element_type=jnp.float32)

    def finalize(acc):
        # residual is the FFN input itself (x_ref).
        y = acc + ob_ref[...].astype(jnp.float32) + x_ref[...].astype(jnp.float32)
        mu = jnp.mean(y, axis=-1, keepdims=True)
        d = y - mu
        var = jnp.mean(d * d, axis=-1, keepdims=True)
        o_ref[...] = (d * jax.lax.rsqrt(var + eps) * g_ref[...]
                      + beta_ref[...]).astype(o_ref.dtype)

    if not multi_k:
        finalize(chunk())
    else:
        @pl.when(pl.program_id(1) == 0)
        def _():
            acc_ref[...] = jnp.zeros_like(acc_ref)

        acc_ref[...] += chunk()

        @pl.when(pl.program_id(1) == pl.num_programs(1) - 1)
        def _():
            finalize(acc_ref[...])


def ffn(x, i_w, i_b, o_w, o_b, *, ln, eps=1e-12, out_dtype=jnp.bfloat16,
        tm=TM_DEFAULT, ti=TI_DEFAULT):
    m, h = x.shape
    inter = i_w.shape[1]
    gamma, beta = ln
    tm = _pick_tile(m, tm, (16, 8))
    ti = _pick_tile(inter, ti, (256, 128))
    nk = inter // ti
    grid = (m // tm, nk)
    scratch = [] if nk == 1 else [pltpu.VMEM((tm, h), jnp.float32)]
    return pl.pallas_call(
        functools.partial(_ffn_kernel, eps=eps, multi_k=(nk > 1)),
        out_shape=jax.ShapeDtypeStruct((m, h), out_dtype),
        grid=grid,
        in_specs=[
            pl.BlockSpec((tm, h), lambda i, k: (i, 0)),      # x (also residual)
            pl.BlockSpec((h, ti), lambda i, k: (0, k)),      # up-proj chunk
            pl.BlockSpec((1, ti), lambda i, k: (0, k)),      # up bias chunk
            pl.BlockSpec((ti, h), lambda i, k: (k, 0)),      # down-proj chunk
            pl.BlockSpec((1, h), lambda i, k: (0, 0)),       # down bias
            pl.BlockSpec((1, h), lambda i, k: (0, 0)),       # ln gamma
            pl.BlockSpec((1, h), lambda i, k: (0, 0)),       # ln beta
        ],
        out_specs=pl.BlockSpec((tm, h), lambda i, k: (i, 0)),
        scratch_shapes=scratch,
        compiler_params=pltpu.CompilerParams(
            dimension_semantics=("parallel", "arbitrary"),
            vmem_limit_bytes=VMEM_LIMIT,
        ),
    )(x, i_w, i_b.reshape(1, inter), o_w, o_b.reshape(1, h),
      gamma.reshape(1, h), beta.reshape(1, h))


# ----------------------------------------------------------------------------
# Plain LayerNorm (embedding LN, no residual)
# ----------------------------------------------------------------------------
def _ln_kernel(x_ref, g_ref, b_ref, o_ref, *, eps):
    x = x_ref[...].astype(jnp.float32)
    mu = jnp.mean(x, axis=-1, keepdims=True)
    d = x - mu
    var = jnp.mean(d * d, axis=-1, keepdims=True)
    o_ref[...] = (d * jax.lax.rsqrt(var + eps) * g_ref[...] + b_ref[...]).astype(
        o_ref.dtype
    )


def layernorm(x, gamma, beta, eps=1e-12, out_dtype=jnp.bfloat16, tm=TM_DEFAULT):
    m, h = x.shape
    tm = _pick_tile(m, tm, (16, 8))
    return pl.pallas_call(
        functools.partial(_ln_kernel, eps=eps),
        out_shape=jax.ShapeDtypeStruct((m, h), out_dtype),
        grid=(m // tm,),
        in_specs=[
            pl.BlockSpec((tm, h), lambda i: (i, 0)),
            pl.BlockSpec((1, h), lambda i: (0, 0)),
            pl.BlockSpec((1, h), lambda i: (0, 0)),
        ],
        out_specs=pl.BlockSpec((tm, h), lambda i: (i, 0)),
        compiler_params=pltpu.CompilerParams(
            dimension_semantics=("parallel",),
            vmem_limit_bytes=VMEM_LIMIT,
        ),
    )(x, gamma.reshape(1, h), beta.reshape(1, h))


# ----------------------------------------------------------------------------
# Multi-head self-attention: `group` heads per grid step, grid = (B, NH//group)
# qkv weight is laid out group-major ([Q_grp | K_grp | V_grp] per group) so
# every slab slice is 128-lane aligned for real BERT (group=2, dh=64).
# Softmax scale is pre-folded into the Q weights.
# ----------------------------------------------------------------------------
def _attn_kernel(qkv_ref, m_ref, o_ref, *, g, dh):
    slab = qkv_ref[0]                                # (S, 3*g*dh) bf16
    mask = m_ref[0].astype(jnp.float32)              # (1, S) additive
    gd = g * dh
    q_all = slab[:, :gd]
    k_all = slab[:, gd:2 * gd]
    v_all = slab[:, 2 * gd:3 * gd]
    outs = []
    # TODO(synk): for very long sequences (S >= 2048) a flash-style key-tiled
    # online softmax would be needed to stay inside v7x's 64 MiB VMEM.
    for head in range(g):                            # bounded: g is 2 for BERT
        lo = head * dh
        q = q_all[:, lo:lo + dh]
        k = k_all[:, lo:lo + dh]
        v = v_all[:, lo:lo + dh]
        # contract on dh without materializing k.T (scale folded into Q cols)
        s = jax.lax.dot_general(q, k, (((1,), (1,)), ((), ())),
                                preferred_element_type=jnp.float32)
        s = s + mask
        s = s - jnp.max(s, axis=-1, keepdims=True)
        p = jnp.exp(s)
        p = p * pl.reciprocal(jnp.sum(p, axis=-1, keepdims=True), approx=True)
        ctx = jnp.dot(p.astype(slab.dtype), v,
                      preferred_element_type=jnp.float32)
        outs.append(ctx.astype(o_ref.dtype))         # early bf16 cast
    o_ref[0] = jnp.concatenate(outs, axis=-1)        # lane-dense (S, g*dh) store


def attention(qkv, mask, *, nh, dh, group):
    """qkv: [B, S, 3H] bf16 (group-major head layout); mask: [B, 1, S] f32."""
    B, S, _ = qkv.shape
    H = nh * dh
    n_groups = nh // group
    gcols = 3 * group * dh
    return pl.pallas_call(
        functools.partial(_attn_kernel, g=group, dh=dh),
        out_shape=jax.ShapeDtypeStruct((B, S, H), qkv.dtype),
        grid=(B, n_groups),
        in_specs=[
            pl.BlockSpec((1, S, gcols), lambda b, hg: (b, 0, hg)),
            pl.BlockSpec((1, 1, S), lambda b, hg: (b, 0, 0)),
        ],
        out_specs=pl.BlockSpec((1, S, group * dh), lambda b, hg: (b, 0, hg)),
        compiler_params=pltpu.CompilerParams(
            dimension_semantics=("parallel", "parallel"),
            vmem_limit_bytes=VMEM_LIMIT,
        ),
    )(qkv, mask)


# ----------------------------------------------------------------------------
# Fused pooler + classification head (classifier padded to 128 lanes at init)
# ----------------------------------------------------------------------------
def _pool_fc_kernel(cls_ref, pw_ref, pb_ref, fw_ref, fb_ref, o_ref):
    pooled = jnp.tanh(
        jnp.dot(cls_ref[...], pw_ref[...], preferred_element_type=jnp.float32)
        + pb_ref[...]
    )
    # classifier matmul kept in f32 (tiny) to avoid extra precision loss
    logits = jnp.dot(pooled, fw_ref[...], preferred_element_type=jnp.float32)
    o_ref[...] = (logits + fb_ref[...]).astype(o_ref.dtype)


def pool_fc(cls, pool_w, pool_b, fc_w_pad, fc_b_pad, classes):
    B, H = cls.shape
    Cpad = fc_w_pad.shape[1]
    out = pl.pallas_call(
        _pool_fc_kernel,
        out_shape=jax.ShapeDtypeStruct((B, Cpad), jnp.float32),
        grid=(1,),
        in_specs=[
            pl.BlockSpec((B, H), lambda i: (0, 0)),
            pl.BlockSpec((H, H), lambda i: (0, 0)),
            pl.BlockSpec((1, H), lambda i: (0, 0)),
            pl.BlockSpec((H, Cpad), lambda i: (0, 0)),
            pl.BlockSpec((1, Cpad), lambda i: (0, 0)),
        ],
        out_specs=pl.BlockSpec((B, Cpad), lambda i: (0, 0)),
        compiler_params=pltpu.CompilerParams(
            dimension_semantics=("arbitrary",),
            vmem_limit_bytes=VMEM_LIMIT,
        ),
    )(cls, pool_w, pool_b.reshape(1, H), fc_w_pad, fc_b_pad)
    return out[:, :classes]


# ----------------------------------------------------------------------------
# Parameter initialization (deterministic, synthetic)
# ----------------------------------------------------------------------------
def _group_qkv(qw, qb, kw, kb, vw, vb, nh, dh, g):
    """Group-major fused QKV layout: per head-group [Q_grp | K_grp | V_grp]."""
    cols, bcols = [], []
    for grp in range(nh // g):
        sl = slice(grp * g * dh, (grp + 1) * g * dh)
        cols += [qw[:, sl], kw[:, sl], vw[:, sl]]
        bcols += [qb[sl], kb[sl], vb[sl]]
    return jnp.concatenate(cols, axis=1), jnp.concatenate(bcols, axis=0)


def init_params(cfg):
    key = jax.random.PRNGKey(0)

    def nxt():
        nonlocal key
        key, sub = jax.random.split(key)
        return sub

    def dense(din, dout):
        w = (0.02 * jax.random.normal(nxt(), (din, dout), jnp.float32)).astype(
            jnp.bfloat16
        )
        b = jnp.zeros((dout,), jnp.float32)
        return w, b

    H, I = cfg["hidden"], cfg["intermediate"]
    NH = cfg["heads"]
    DH = H // NH
    G = _head_group(NH, DH)
    scale = 1.0 / float(DH) ** 0.5

    params = {
        "word_emb": 0.02 * jax.random.normal(nxt(), (cfg["vocab"], H), jnp.float32),
        "pos_emb": 0.02 * jax.random.normal(nxt(), (cfg["max_pos"], H), jnp.float32),
        "type_emb": 0.02 * jax.random.normal(nxt(), (2, H), jnp.float32),
        "emb_ln_g": jnp.ones((H,), jnp.float32),
        "emb_ln_b": jnp.zeros((H,), jnp.float32),
        "layers": [],
    }
    for _ in range(cfg["layers"]):
        qw, qb = dense(H, H)
        kw, kb = dense(H, H)
        vw, vb = dense(H, H)
        aw, ab = dense(H, H)
        iw, ib = dense(H, I)
        ow, ob = dense(I, H)
        # fold softmax 1/sqrt(dh) into the Q projection (free at runtime)
        qw_s = (qw.astype(jnp.float32) * scale).astype(jnp.bfloat16)
        qb_s = qb * scale
        qkv_w, qkv_b = _group_qkv(qw_s, qb_s, kw, kb, vw, vb, NH, DH, G)
        params["layers"].append(
            dict(
                qkv_w=qkv_w, qkv_b=qkv_b,
                ao_w=aw, ao_b=ab,
                attn_ln_g=jnp.ones((H,), jnp.float32),
                attn_ln_b=jnp.zeros((H,), jnp.float32),
                i_w=iw, i_b=ib, o_w=ow, o_b=ob,
                out_ln_g=jnp.ones((H,), jnp.float32),
                out_ln_b=jnp.zeros((H,), jnp.float32),
            )
        )
    params["pool_w"], params["pool_b"] = dense(H, H)
    fc_w, fc_b = dense(H, cfg["classes"])
    # hoist the classifier lane-padding out of the forward pass (done once)
    C = cfg["classes"]
    Cpad = max(128, ((C + 127) // 128) * 128)
    params["fc_w_pad"] = jnp.zeros((H, Cpad), jnp.float32).at[:, :C].set(
        fc_w.astype(jnp.float32)
    )
    params["fc_b_pad"] = jnp.zeros((1, Cpad), jnp.float32).at[:, :C].set(fc_b)
    return params


# ----------------------------------------------------------------------------
# Forward pass (BertModel + pooler + fc)
# ----------------------------------------------------------------------------
def bert_forward(params, input_ids, attention_mask, token_type_ids, cfg):
    B, S = input_ids.shape
    H = cfg["hidden"]
    NH = cfg["heads"]
    DH = H // NH
    G = _head_group(NH, DH)

    # Embeddings (gather in plain JAX glue); sum cast to bf16 to halve the
    # LN kernel's HBM read.  LN runs in Pallas.
    pos = jnp.arange(S)
    emb = (
        params["word_emb"][input_ids]
        + params["pos_emb"][pos][None, :, :]
        + params["type_emb"][token_type_ids]
    ).astype(jnp.bfloat16)
    h = layernorm(emb.reshape(B * S, H), params["emb_ln_g"], params["emb_ln_b"])

    # HF-style extended additive attention mask, [B, 1, S].
    ext_mask = ((1.0 - attention_mask.astype(jnp.float32)) * -10000.0).reshape(
        B, 1, S
    )

    for lyr in params["layers"]:
        # Fused Q/K/V projection: one [H, 3H] GEMM (K never split).
        qkv = linear(h, lyr["qkv_w"], lyr["qkv_b"])                 # [B*S, 3H]
        ctx = attention(qkv.reshape(B, S, 3 * H), ext_mask, nh=NH, dh=DH, group=G)
        # Attention output projection with fused residual-add + LayerNorm.
        h = linear(ctx.reshape(B * S, H), lyr["ao_w"], lyr["ao_b"],
                   residual=h, ln=(lyr["attn_ln_g"], lyr["attn_ln_b"]))
        # Fused FFN (up GEMM + GELU + down GEMM + residual + LayerNorm):
        # the [B*S, I] intermediate stays in VMEM.
        h = ffn(h, lyr["i_w"], lyr["i_b"], lyr["o_w"], lyr["o_b"],
                ln=(lyr["out_ln_g"], lyr["out_ln_b"]))

    # Pooler (tanh(W * hidden[:, 0] + b) == HF outputs[1]) + classifier fc.
    cls = h.reshape(B, S, H)[:, 0, :]                               # [B, H]
    logits = pool_fc(cls, params["pool_w"], params["pool_b"],
                     params["fc_w_pad"], params["fc_b_pad"], cfg["classes"])
    return logits


# ----------------------------------------------------------------------------
if __name__ == "__main__":
    cfg = dict(
        vocab=100, hidden=32, heads=4, layers=2, intermediate=64,
        max_pos=16, classes=14,
    )
    B, S = 2, 8

    key = jax.random.PRNGKey(0)
    input_ids = jax.random.randint(key, (B, S), 0, cfg["vocab"], dtype=jnp.int32)
    attention_mask = jnp.ones((B, S), jnp.int32)
    token_type_ids = jnp.zeros((B, S), jnp.int32)

    params = init_params(cfg)
    logits = bert_forward(params, input_ids, attention_mask, token_type_ids, cfg)
    logits = jax.block_until_ready(logits)

    assert logits.shape == (B, cfg["classes"]), logits.shape
    assert bool(jnp.all(jnp.isfinite(logits)))
    print("KERNEL_OK")
</pallas_src>

<mosaic_0001>
module attributes {stable_mosaic.version = 11 : i64} {
  func.func @_ln_kernel(%arg0: i32, %arg1: memref<16x32xbf16, #tpu.memory_space<vmem>>, %arg2: memref<1x32xf32, #tpu.memory_space<vmem>>, %arg3: memref<1x32xf32, #tpu.memory_space<vmem>>, %arg4: memref<16x32xbf16, #tpu.memory_space<vmem>>) attributes {dimension_semantics = [#tpu.dimension_semantics<parallel>], iteration_bounds = array<i64: 1>, scalar_prefetch = 0 : i64, scratch_operands = 0 : i64, tpu.core_type = #tpu.core_type<tc>, window_params = [{transform_indices = @transform_0, window_bounds = array<i64: 16, 32>}, {pipeline_mode = #tpu.pipeline_mode<synchronous>, transform_indices = @transform_1, window_bounds = array<i64: 1, 32>}, {pipeline_mode = #tpu.pipeline_mode<synchronous>, transform_indices = @transform_2, window_bounds = array<i64: 1, 32>}, {transform_indices = @transform_3, window_bounds = array<i64: 16, 32>}]} {
    %c0 = arith.constant 0 : index
    %c0_0 = arith.constant 0 : index
    %0 = vector.load %arg1[%c0, %c0_0] : memref<16x32xbf16, #tpu.memory_space<vmem>>, vector<16x32xbf16>
    %1 = arith.extf %0 : vector<16x32xbf16> to vector<16x32xf32>
    %cst = arith.constant dense<0.000000e+00> : vector<16xf32>
    %2 = vector.multi_reduction <add>, %1, %cst [1] : vector<16x32xf32> to vector<16xf32>
    %3 = vector.shape_cast %2 : vector<16xf32> to vector<16x1xf32>
    %cst_1 = arith.constant 3.200000e+01 : f32
    %4 = vector.broadcast %cst_1 : f32 to vector<16x1xf32>
    %5 = arith.divf %3, %4 : vector<16x1xf32>
    %6 = vector.broadcast %5 : vector<16x1xf32> to vector<16x32xf32>
    %7 = arith.subf %1, %6 : vector<16x32xf32>
    %8 = arith.mulf %7, %7 : vector<16x32xf32>
    %cst_2 = arith.constant dense<0.000000e+00> : vector<16xf32>
    %9 = vector.multi_reduction <add>, %8, %cst_2 [1] : vector<16x32xf32> to vector<16xf32>
    %10 = vector.shape_cast %9 : vector<16xf32> to vector<16x1xf32>
    %cst_3 = arith.constant 3.200000e+01 : f32
    %11 = vector.broadcast %cst_3 : f32 to vector<16x1xf32>
    %12 = arith.divf %10, %11 : vector<16x1xf32>
    %cst_4 = arith.constant 9.99999996E-13 : f32
    %13 = vector.broadcast %cst_4 : f32 to vector<16x1xf32>
    %14 = arith.addf %12, %13 : vector<16x1xf32>
    %15 = math.rsqrt %14 : vector<16x1xf32>
    %16 = vector.broadcast %15 : vector<16x1xf32> to vector<16x32xf32>
    %17 = arith.mulf %7, %16 : vector<16x32xf32>
    %c0_5 = arith.constant 0 : index
    %c0_6 = arith.constant 0 : index
    %18 = vector.load %arg2[%c0_5, %c0_6] : memref<1x32xf32, #tpu.memory_space<vmem>>, vector<1x32xf32>
    %19 = vector.broadcast %18 : vector<1x32xf32> to vector<16x32xf32>
    %20 = arith.mulf %17, %19 : vector<16x32xf32>
    %c0_7 = arith.constant 0 : index
    %c0_8 = arith.constant 0 : index
    %21 = vector.load %arg3[%c0_7, %c0_8] : memref<1x32xf32, #tpu.memory_space<vmem>>, vector<1x32xf32>
    %22 = vector.broadcast %21 : vector<1x32xf32> to vector<16x32xf32>
    %23 = arith.addf %20, %22 : vector<16x32xf32>
    %24 = arith.truncf %23 : vector<16x32xf32> to vector<16x32xbf16>
    %c0_9 = arith.constant 0 : index
    %c0_10 = arith.constant 0 : index
    %25 = vector.load %arg4[%c0_9, %c0_10] : memref<16x32xbf16, #tpu.memory_space<vmem>>, vector<16x32xbf16>
    tpu.vector_store %arg4[%c0_9, %c0_10], %24 {strides = array<i32>} : memref<16x32xbf16, #tpu.memory_space<vmem>>, vector<16x32xbf16>,
    return
  }
  func.func @transform_0(%arg0: i32) -> (i32, i32) {
    %c0_i32 = arith.constant 0 : i32
    %c0_i32_0 = arith.constant 0 : i32
    return %arg0, %c0_i32 : i32, i32
  }
  func.func @transform_1(%arg0: i32) -> (i32, i32) {
    %c0_i32 = arith.constant 0 : i32
    %c0_i32_0 = arith.constant 0 : i32
    %c0_i32_1 = arith.constant 0 : i32
    return %c0_i32, %c0_i32_0 : i32, i32
  }
  func.func @transform_2(%arg0: i32) -> (i32, i32) {
    %c0_i32 = arith.constant 0 : i32
    %c0_i32_0 = arith.constant 0 : i32
    %c0_i32_1 = arith.constant 0 : i32
    return %c0_i32, %c0_i32_0 : i32, i32
  }
  func.func @transform_3(%arg0: i32) -> (i32, i32) {
    %c0_i32 = arith.constant 0 : i32
    %c0_i32_0 = arith.constant 0 : i32
    return %arg0, %c0_i32 : i32, i32
  }
}

</mosaic_0001>

<bundles_post_ra>
// kernel: tpu_custom_call.1
= control target key start
LH: loop header
LB: loop body
LE: loop exit
PB: predicated region body
PF: predicated region fallthrough
CT: control target
= control target key end

     0   :  { %8 = vsyncpa [#allocation3], 0  ;;  %s237_s0 = inlined_call_operand.hbm [shape: bf16[16,32], index: 0, kind: input, shape index: {}]   ;;  %s238_s1 = inlined_call_operand.vmem [shape: f32[1,32], index: 1, kind: input, shape index: {}]   ;;  %s239_s2 = inlined_call_operand.vmem [shape: f32[1,32], index: 2, kind: input, shape index: {}]   ;;  %s240_s3 = inlined_call_operand.hbm [shape: bf16[16,32], index: 3, kind: output, shape index: {}]  }
   0x1   :  { %9 = vsyncpa [#allocation4], 0  ;;  %s173_s12 = smov [#allocation2]   ;;  %s125_s16 = scalar_lea.hbm %s237_s0, 128 }
   0x2   :  { %s15_s13 = sshll.u32 %s173_s12, 4  ;;  %p126_p0 = scmp.ne.s32.totalorder %s237_s0, %s125_s16  ;;  %s16_s13 = int_to_ptr.vmem [resolvable:$true] %s15_s13 }
   0x3   :  { %p129_p1 = scmp.lt.u32.totalorder %s125_s16, %s237_s0 }
   0x5   :  { %p131_p2 = pnand %p129_p1, %p126_p0 }
   0x7   :  { %134 = shalt.err (!%p131_p2)
}
   0x8   :  { %s135_s21 = scalar_lea.vmem %s16_s13, 128  ;;  %p140_p4 = scmp.lt.s32.totalorder %s16_s13, %s16_s13 }
   0x9   :  { %p136_p3 = scmp.ne.s32.totalorder %s16_s13, %s135_s21  ;;  %p141_p5 = scmp.lt.s32.totalorder %s135_s21, %s135_s21 }
   0xb   :  { %p142_p6 = por %p141_p5, %p140_p4 }
   0xd   :  { %p143_p7 = pnand %p142_p6, %p136_p3 }
   0xf   :  { %146 = shalt.err (!%p143_p7)
}
  0x10   :  { %s174_s22 = smov 64   ;;  %s175_s23 = smov 4  }
  0x11   :  { %21 = dma.hbm_to_vmem [thread:$0]  %s237_s0, 128, %s16_s13, [#allocation3], %s174_s22, %s174_s22, %s175_s23  }
  0x12   :  { %169 = dma.done.wait [#allocation3], 128  }
  0x13   :  { %170 = vsyncadd [#allocation3], 4294967168  ;;  %v114_v0 = vld [vmem:[#allocation2] sm:$0xff]   ;;  %vm33_vm0 = vcmask 261120   ;;  %vm87_vm1 = vcmask 257024   ;;  %s176_s29 = smov [#allocation5]  }
  0x14   :  { %v115_v1 = vunpack.c.l.bf16 %v114_v0  ;;  %v116_v2 = vunpack.c.h.bf16 %v114_v0  ;;  %v107_v22 = vld [vmem:[%s238_s1] ss:$0 sm:$0xff]  ;;  %s95_s30 = sshll.u32 %s176_s29, 4  ;;  %s96_s30 = int_to_ptr.vmem [resolvable:$true] %s95_s30 }
  0x15   :  { %v108_v24 = vld [vmem:[%s239_s2] ss:$0 sm:$0xff]  ;;  %s147_s1 = scalar_lea.vmem %s96_s30, 128  ;;  %p152_p9 = scmp.lt.s32.totalorder %s96_s30, %s96_s30 }
  0x16   :  { %v34_v3 = vsel %vm33_vm0, %v115_v1, 0.0  ;;  %v37_v4 = vsel %vm33_vm0, %v116_v2, 0.0  ;;  %p148_p8 = scmp.ne.s32.totalorder %s96_s30, %s147_s1  ;;  %p153_p10 = scmp.lt.s32.totalorder %s147_s1, %s147_s1 }
  0x17   :  { %35 = vadd.xlane.f32.xlu0 %v34_v3 }
  0x18   :  { %p154_p11 = por %p153_p10, %p152_p9 }
  0x1a   :  { %p155_p12 = pnand %p154_p11, %p148_p8 }
  0x1b   :  { %38 = vadd.xlane.f32.xlu0 %v37_v4 }
  0xa4   :  { %v36_v5 = vpop.xlane.xlu0 %35 }
  0xa5   :  { %v41_v6 = vmul.f32 0.03125, %v36_v5 }
  0xa7   :  { %v43_v7 = vsub.f32 %v115_v1, %v41_v6 }
  0xa8   :  { %v39_v8 = vpop.xlane.xlu0 %38 }
  0xa9   :  { %v42_v9 = vmul.f32 0.03125, %v39_v8  ;;  %v45_v10 = vmul.f32 %v43_v7, %v43_v7 }
  0xab   :  { %v44_v11 = vsub.f32 %v116_v2, %v42_v9  ;;  %v47_v12 = vsel %vm33_vm0, %v45_v10, 0.0 }
  0xac   :  { %48 = vadd.xlane.f32.xlu1 %v47_v12 }
  0xad   :  { %v46_v13 = vmul.f32 %v44_v11, %v44_v11 }
  0xaf   :  { %v50_v14 = vsel %vm33_vm0, %v46_v13, 0.0 }
  0xb0   :  { %51 = vadd.xlane.f32.xlu1 %v50_v14 }
 0x139   :  { %v49_v15 = vpop.xlane.xlu1 %48 }
 0x13a   :  { %v53_v16 = vmul.f32 0.03125, %v49_v15 }
 0x13c   :  { %v55_v17 = vadd.f32 1e-12, %v53_v16 }
 0x13d   :  { %v52_v18 = vpop.xlane.xlu1 %51 }
 0x13e   :  { %121 = vrsqrt.f32 %v55_v17  ;;  %v54_v19 = vmul.f32 0.03125, %v52_v18 }
 0x140   :  { %v56_v20 = vadd.f32 1e-12, %v54_v19 }
 0x142   :  { %123 = vrsqrt.f32 %v56_v20 }
 0x148   :  { %v122_v21 = vpop.eup %121 }
 0x149   :  { %v59_v23 = vmul.f32 %v122_v21, %v43_v7 }
 0x14b   :  { %v68_v25 = vmul.f32 %v107_v22, %v59_v23 }
 0x14c   :  { %v124_v26 = vpop.eup %123 }
 0x14d   :  { %v60_v27 = vmul.f32 %v124_v26, %v44_v11  ;;  %v77_v28 = vadd.f32 %v108_v24, %v68_v25 }
 0x14f   :  { %v69_v29 = vmul.f32 %v107_v22, %v60_v27  ;;  %v111_v30 = vpack.c.bf16 %v77_v28, %v77_v28 }
 0x151   :  { %v78_v31 = vadd.f32 %v108_v24, %v69_v29  ;;  %88 = vst.msk [vmem:[#allocation5] sm:$0xf] %vm87_vm1, %v111_v30 }
 0x153   :  { %v112_v32 = vpack.c.bf16 %v78_v31, %v78_v31 }
 0x155   :  { %89 = vst.msk [vmem:[#allocation5 + $0x4] sm:$0xf] %vm87_vm1, %v112_v32 }
 0x156   :  { %158 = shalt.err (!%p155_p12)
}
 0x157   :  { %s159_s5 = scalar_lea.hbm %s240_s3, 128 }
 0x158   :  { %p160_p13 = scmp.ne.s32.totalorder %s240_s3, %s159_s5  ;;  %p163_p0 = scmp.lt.u32.totalorder %s159_s5, %s240_s3 }
 0x15a   :  { %p165_p1 = pnand %p163_p0, %p160_p13 }
 0x15c   :  { %168 = shalt.err (!%p165_p1)
}
 0x15d   :  { %101 = dma.vmem_to_hbm [thread:$0]  %s96_s30, 128, %s240_s3, [#allocation4], %s174_s22, %s174_s22, %s175_s23  }
 0x15e   :  { %171 = dma.done.wait [#allocation4], 128  }
 0x15f   :  { %172 = vsyncadd [#allocation4], 4294967168 }
 0x160   :  { %105 = vsyncpa [#allocation3], 1 }
 0x161   :  { %106 = vsyncpa [#allocation4], 1 }

</bundles_post_ra>
